<compile_context>
chip_gen: v6e
topology: v6e:2x2x1
jax: 0.10.0
libtpu: 0.0.40
codegen_flags: <defaults>
</compile_context>

<pallas_src>
import functools

import jax
import jax.numpy as jnp
from jax import lax
from jax.experimental import pallas as pl
from jax.experimental.pallas import tpu as pltpu

_LANES = 128   # vreg lane width
_SUB = 8       # rows (sublanes) per inner compute chunk -> 1 f32 vreg


def _tversky_kernel(x_ref, t_ref, o_ref, inter_acc, cnt_acc, *,
                    alpha, beta, eps, hw):
    """One (batch-block, row-block) grid step.

    x_ref:     (BB, C, TR, 128)  logits block (input dtype)
    t_ref:     (BB, TR, 128)     integer labels block
    o_ref:     (BB, 1)  f32      per-sample loss terms (SMEM)
    inter_acc: (BB, 8, 128) f32  running sum of softmax[label]
    cnt_acc:   (BB, 8, 128) f32  running count of valid, in-range labels
    """
    r = pl.program_id(1)
    BB, C, TR, _ = x_ref.shape

    @pl.when(r == 0)
    def _init():
        inter_acc[...] = jnp.zeros_like(inter_acc)
        cnt_acc[...] = jnp.zeros_like(cnt_acc)

    row0 = r * TR  # global 128-pixel-row index of this block's first row

    def process(bb, row_start, nrows):
        # bb / row_start may be traced scalars; nrows is static.
        rows = pl.ds(row_start, nrows)

        # Validity mask from the global pixel index: kills the sub-128 tail,
        # the ragged last row/batch blocks, and replaces the old -1 sentinel.
        g_row = row0 + row_start + lax.broadcasted_iota(
            jnp.int32, (nrows, _LANES), 0)
        pix = g_row * _LANES + lax.broadcasted_iota(
            jnp.int32, (nrows, _LANES), 1)
        valid = pix < hw

        t = t_ref[bb, rows, :]

        # Numerically stable softmax over the channel axis (small C -> unroll).
        m = x_ref[bb, 0, rows, :].astype(jnp.float32)
        for c in range(1, C):
            m = jnp.maximum(m, x_ref[bb, c, rows, :].astype(jnp.float32))
        sum_e = jnp.zeros_like(m)
        e_tgt = jnp.zeros_like(m)
        for c in range(C):
            e_c = jnp.exp(x_ref[bb, c, rows, :].astype(jnp.float32) - m)
            sum_e = sum_e + e_c
            e_tgt = jnp.where(t == c, e_c, e_tgt)
        soft_tgt = e_tgt * pl.reciprocal(sum_e, approx=False)

        in_range = jnp.logical_and(t >= 0, t < C)
        ok = jnp.logical_and(valid, in_range)

        acc_rows = pl.ds(0, nrows)
        inter_acc[bb, acc_rows, :] += jnp.where(valid, soft_tgt, 0.0)
        # NOTE: if labels are guaranteed valid, cnt_acc could be dropped and
        # fns computed as hw - inter (saves one accumulator RMW per chunk).
        cnt_acc[bb, acc_rows, :] += jnp.where(ok, 1.0, 0.0)

    num_full = TR // _SUB
    rem = TR - num_full * _SUB

    def row_loop(bb):
        if num_full > 0:
            if num_full <= 4:                      # short -> static unroll
                for j in range(num_full):
                    process(bb, j * _SUB, _SUB)
            else:
                def body(j, carry):
                    process(bb, pl.multiple_of(j * _SUB, _SUB), _SUB)
                    return carry
                lax.fori_loop(0, num_full, body, 0)
        if rem > 0:
            process(bb, num_full * _SUB, rem)

    if BB == 1:
        row_loop(0)
    else:
        def bb_body(bb, carry):
            row_loop(bb)
            return carry
        lax.fori_loop(0, BB, bb_body, 0)

    @pl.when(r == pl.num_programs(1) - 1)
    def _finalize():
        for bb in range(BB):
            inter = jnp.sum(inter_acc[bb])
            cnt = jnp.sum(cnt_acc[bb])
            fps = hw - inter          # sum(soft * (1 - onehot))
            fns = cnt - inter         # sum((1 - soft) * onehot)
            denom = inter + alpha * fps + beta * fns + eps
            o_ref[bb, 0] = (1.0 - inter / denom).astype(jnp.float32)


def _round_down(x, m):
    return (x // m) * m


def tversky_loss(logits_nchw, target_bhw, alpha, beta, eps=1e-6, *,
                 target_block_bytes=2 * 1024 * 1024,
                 tile_rows=None, batch_block=None):
    """mean_b(1 - Tversky index), matching the torch module's forward."""
    B, C, H, W = logits_nchw.shape
    assert target_bhw.shape[-2:] == (H, W), "input/target spatial mismatch"
    HW = H * W
    R = pl.cdiv(HW, _LANES)
    dsz = jnp.dtype(logits_nchw.dtype).itemsize

    x = logits_nchw.reshape(B, C, HW)
    t = target_bhw.reshape(B, HW)
    # Keep narrow integer labels as-is (int8 = 1 B/pixel HBM); only widen when
    # unavoidable.
    if t.dtype not in (jnp.dtype(jnp.int8), jnp.dtype(jnp.uint8),
                       jnp.dtype(jnp.int16), jnp.dtype(jnp.int32)):
        t = t.astype(jnp.int32)
    elif jnp.dtype(t.dtype).itemsize == 1 and C > 127:
        t = t.astype(jnp.int32)
    tsz = jnp.dtype(t.dtype).itemsize

    pad = R * _LANES - HW
    if pad:
        # Only the sub-128 remainder is padded; HW % 128 == 0 is copy-free.
        # TODO(synk): a fully copy-free ragged path needs a channels-on-sublane
        # layout whose XLU cost outweighs the pad for small C; revisit if
        # HW % 128 != 0 shapes dominate.
        x = jnp.pad(x, ((0, 0), (0, 0), (0, pad)))
        t = jnp.pad(t, ((0, 0), (0, pad)))
    x = x.reshape(B, C, R, _LANES)
    t = t.reshape(B, R, _LANES)

    # Row-block sizing: logits block ~target_block_bytes.
    ideal = int(tile_rows) if tile_rows is not None else max(
        _SUB, target_block_bytes // (C * _LANES * dsz))
    if ideal >= R:
        TR = R
    else:
        TR = min(R, max(32, _round_down(ideal, 32)))
    num_r = pl.cdiv(R, TR)

    # Batch-block sizing: pack several small samples per step.
    per_sample_bytes = C * TR * _LANES * dsz
    if batch_block is not None:
        BB = int(min(B, max(1, batch_block)))
    else:
        BB = int(min(B, max(1, target_block_bytes // per_sample_bytes)))
    grid_b = pl.cdiv(B, BB)

    # Explicit VMEM budget: double-buffered inputs + accumulators + headroom,
    # above v5e's 16 MiB scoped default, well under v7x's 64 MiB physical.
    need = 2 * BB * (C * TR * _LANES * dsz + TR * _LANES * tsz) \
        + 2 * BB * _SUB * _LANES * 4
    vmem_limit = int(min(96 * 2**20, max(2 * need, 24 * 2**20)))

    kernel = functools.partial(
        _tversky_kernel, alpha=float(alpha), beta=float(beta),
        eps=float(eps), hw=HW)

    per_sample_loss = pl.pallas_call(
        kernel,
        out_shape=jax.ShapeDtypeStruct((B, 1), jnp.float32),
        grid_spec=pltpu.PrefetchScalarGridSpec(
            num_scalar_prefetch=0,
            grid=(grid_b, num_r),
            in_specs=[
                # TODO(synk): sweep pipeline_mode=pl.Buffered(3) on the logits
                # spec once verified against the target jax version.
                pl.BlockSpec((BB, C, TR, _LANES), lambda b, r: (b, 0, r, 0)),
                pl.BlockSpec((BB, TR, _LANES), lambda b, r: (b, r, 0)),
            ],
            out_specs=pl.BlockSpec((BB, 1), lambda b, r: (b, 0),
                                   memory_space=pltpu.SMEM),
            scratch_shapes=[
                pltpu.VMEM((BB, _SUB, _LANES), jnp.float32),  # sum softmax[t]
                pltpu.VMEM((BB, _SUB, _LANES), jnp.float32),  # valid-label cnt
            ],
        ),
        compiler_params=pltpu.CompilerParams(
            # TODO(synk): on v7x with B==1/odd B, additionally split the row
            # axis across the two TensorCores and combine partials in JAX.
            dimension_semantics=("parallel", "arbitrary"),
            vmem_limit_bytes=vmem_limit,
        ),
    )(x, t)

    # mean over batch of (1 - tversky)  (glue)
    return jnp.mean(per_sample_loss)


def _reference(logits_nchw, target_bhw, alpha, beta, eps=1e-6):
    B, C, H, W = logits_nchw.shape
    soft = jax.nn.softmax(logits_nchw.astype(jnp.float32), axis=1)
    one_hot = jax.nn.one_hot(target_bhw, C, axis=1, dtype=jnp.float32)
    dims = (1, 2, 3)
    inter = jnp.sum(soft * one_hot, dims)
    fps = jnp.sum(soft * (1.0 - one_hot), dims)
    fns = jnp.sum((1.0 - soft) * one_hot, dims)
    tv = inter / (inter + alpha * fps + beta * fns + eps)
    return jnp.mean(1.0 - tv)


if __name__ == "__main__":
    alpha, beta = 0.5, 0.7
    key = jax.random.PRNGKey(0)
    k1, k2, k3, k4 = jax.random.split(key, 4)

    # Case 1: canonical spec shape (B=2, C=4, 16x16), f32 logits, int32 labels.
    logits = jax.random.normal(k1, (2, 4, 16, 16), dtype=jnp.float32)
    target = jax.random.randint(k2, (2, 16, 16), 0, 4, dtype=jnp.int32)
    out = tversky_loss(logits, target, alpha, beta)
    jax.block_until_ready(out)
    ref = _reference(logits, target, alpha, beta)
    assert jnp.allclose(out, ref, atol=2e-5, rtol=2e-5), (out, ref)

    # Case 2: same data, int8 labels (narrow-dtype HBM path).
    out8 = tversky_loss(logits, target.astype(jnp.int8), alpha, beta)
    jax.block_until_ready(out8)
    assert jnp.allclose(out8, ref, atol=2e-5, rtol=2e-5), (out8, ref)

    # Case 3: ragged everything — HW % 128 != 0 (masked tail), R % TR != 0,
    # B % BB != 0, multi-step row reduction, int8 labels, out-of-range label.
    logits3 = jax.random.normal(k3, (3, 5, 65, 89), dtype=jnp.float32)
    target3 = jax.random.randint(k4, (3, 65, 89), 0, 5, dtype=jnp.int32)
    target3 = target3.at[:, 0, :3].set(5)        # out-of-range -> zero one-hot
    target3 = target3.astype(jnp.int8)
    out3 = tversky_loss(logits3, target3, alpha, beta,
                        tile_rows=32, batch_block=2)
    jax.block_until_ready(out3)
    ref3 = _reference(logits3, target3, alpha, beta)
    assert jnp.allclose(out3, ref3, atol=2e-5, rtol=2e-5), (out3, ref3)

    print("KERNEL_OK")
</pallas_src>

<mosaic_0001>
module attributes {stable_mosaic.version = 11 : i64} {
  func.func @_tversky_kernel(%arg0: i32, %arg1: i32, %arg2: memref<2x4x2x128xf32, #tpu.memory_space<vmem>>, %arg3: memref<2x2x128xi32, #tpu.memory_space<vmem>>, %arg4: memref<2x1xf32, #tpu.memory_space<smem>>, %arg5: memref<2x8x128xf32, #tpu.memory_space<vmem>>, %arg6: memref<2x8x128xf32, #tpu.memory_space<vmem>>) attributes {dimension_semantics = [#tpu.dimension_semantics<parallel>, #tpu.dimension_semantics<arbitrary>], iteration_bounds = array<i64: 1, 1>, scalar_prefetch = 0 : i64, scratch_operands = 2 : i64, tpu.core_type = #tpu.core_type<tc>, window_params = [{transform_indices = @transform_0, window_bounds = array<i64: 2, 4, 2, 128>}, {transform_indices = @transform_1, window_bounds = array<i64: 2, 2, 128>}, {transform_indices = @transform_2, window_bounds = array<i64: 2, 1>}]} {
    %c0_i32 = arith.constant 0 : i32
    %0 = arith.cmpi eq, %arg1, %c0_i32 : i32
    %1 = arith.extui %0 : i1 to i32
    %c0_i32_0 = arith.constant 0 : i32
    %2 = arith.cmpi ne, %1, %c0_i32_0 : i32
    scf.if %2 {
      %cst = arith.constant 0.000000e+00 : f32
      %8 = vector.broadcast %cst : f32 to vector<2x8x128xf32>
      %c0 = arith.constant 0 : index
      %c0_6 = arith.constant 0 : index
      %c0_7 = arith.constant 0 : index
      %9 = vector.load %arg5[%c0, %c0_6, %c0_7] : memref<2x8x128xf32, #tpu.memory_space<vmem>>, vector<2x8x128xf32>
      tpu.vector_store %arg5[%c0, %c0_6, %c0_7], %8 {strides = array<i32>} : memref<2x8x128xf32, #tpu.memory_space<vmem>>, vector<2x8x128xf32>,
      %cst_8 = arith.constant 0.000000e+00 : f32
      %10 = vector.broadcast %cst_8 : f32 to vector<2x8x128xf32>
      %c0_9 = arith.constant 0 : index
      %c0_10 = arith.constant 0 : index
      %c0_11 = arith.constant 0 : index
      %11 = vector.load %arg6[%c0_9, %c0_10, %c0_11] : memref<2x8x128xf32, #tpu.memory_space<vmem>>, vector<2x8x128xf32>
      tpu.vector_store %arg6[%c0_9, %c0_10, %c0_11], %10 {strides = array<i32>} : memref<2x8x128xf32, #tpu.memory_space<vmem>>, vector<2x8x128xf32>,
    } else {
    }
    %c2_i32 = arith.constant 2 : i32
    %3 = arith.muli %arg1, %c2_i32 : i32
    %c0_i32_1 = arith.constant 0 : i32
    %c2_i32_2 = arith.constant 2 : i32
    %4 = arith.addi %c0_i32_1, %c2_i32_2 : i32
    %c1_i32 = arith.constant 1 : i32
    scf.for %arg7 = %c0_i32_1 to %4 step %c1_i32  : i32 {
      %c0_i32_6 = arith.constant 0 : i32
      %8 = arith.addi %3, %c0_i32_6 : i32
      %9 = tpu.iota {dimensions = array<i32: 0>} : vector<2x128xi32>
      %10 = vector.broadcast %8 : i32 to vector<2x128xi32>
      %11 = arith.addi %10, %9 : vector<2x128xi32>
      %c128_i32 = arith.constant 128 : i32
      %12 = vector.broadcast %c128_i32 : i32 to vector<2x128xi32>
      %13 = arith.muli %11, %12 : vector<2x128xi32>
      %14 = tpu.iota {dimensions = array<i32: 1>} : vector<2x128xi32>
      %15 = arith.addi %13, %14 : vector<2x128xi32>
      %c256_i32 = arith.constant 256 : i32
      %16 = vector.broadcast %c256_i32 : i32 to vector<2x128xi32>
      %17 = arith.cmpi slt, %15, %16 : vector<2x128xi32>
      %18 = arith.index_cast %arg7 : i32 to index
      %c0 = arith.constant 0 : index
      %c0_7 = arith.constant 0 : index
      %19 = vector.load %arg3[%18, %c0, %c0_7] : memref<2x2x128xi32, #tpu.memory_space<vmem>>, vector<1x2x128xi32>
      %20 = vector.shape_cast %19 : vector<1x2x128xi32> to vector<2x128xi32>
      %21 = arith.index_cast %arg7 : i32 to index
      %c0_8 = arith.constant 0 : index
      %c0_9 = arith.constant 0 : index
      %c0_10 = arith.constant 0 : index
      %22 = vector.load %arg2[%21, %c0_8, %c0_9, %c0_10] : memref<2x4x2x128xf32, #tpu.memory_space<vmem>>, vector<1x1x2x128xf32>
      %23 = vector.shape_cast %22 : vector<1x1x2x128xf32> to vector<2x128xf32>
      %24 = arith.index_cast %arg7 : i32 to index
      %c1 = arith.constant 1 : index
      %c0_11 = arith.constant 0 : index
      %c0_12 = arith.constant 0 : index
      %25 = vector.load %arg2[%24, %c1, %c0_11, %c0_12] : memref<2x4x2x128xf32, #tpu.memory_space<vmem>>, vector<1x1x2x128xf32>
      %26 = vector.shape_cast %25 : vector<1x1x2x128xf32> to vector<2x128xf32>
      %27 = arith.maximumf %23, %26 : vector<2x128xf32>
      %28 = arith.index_cast %arg7 : i32 to index
      %c2 = arith.constant 2 : index
      %c0_13 = arith.constant 0 : index
      %c0_14 = arith.constant 0 : index
      %29 = vector.load %arg2[%28, %c2, %c0_13, %c0_14] : memref<2x4x2x128xf32, #tpu.memory_space<vmem>>, vector<1x1x2x128xf32>
      %30 = vector.shape_cast %29 : vector<1x1x2x128xf32> to vector<2x128xf32>
      %31 = arith.maximumf %27, %30 : vector<2x128xf32>
      %32 = arith.index_cast %arg7 : i32 to index
      %c3 = arith.constant 3 : index
      %c0_15 = arith.constant 0 : index
      %c0_16 = arith.constant 0 : index
      %33 = vector.load %arg2[%32, %c3, %c0_15, %c0_16] : memref<2x4x2x128xf32, #tpu.memory_space<vmem>>, vector<1x1x2x128xf32>
      %34 = vector.shape_cast %33 : vector<1x1x2x128xf32> to vector<2x128xf32>
      %35 = arith.maximumf %31, %34 : vector<2x128xf32>
      %cst = arith.constant 0.000000e+00 : f32
      %36 = vector.broadcast %cst : f32 to vector<2x128xf32>
      %cst_17 = arith.constant 0.000000e+00 : f32
      %37 = vector.broadcast %cst_17 : f32 to vector<2x128xf32>
      %38 = arith.index_cast %arg7 : i32 to index
      %c0_18 = arith.constant 0 : index
      %c0_19 = arith.constant 0 : index
      %c0_20 = arith.constant 0 : index
      %39 = vector.load %arg2[%38, %c0_18, %c0_19, %c0_20] : memref<2x4x2x128xf32, #tpu.memory_space<vmem>>, vector<1x1x2x128xf32>
      %40 = vector.shape_cast %39 : vector<1x1x2x128xf32> to vector<2x128xf32>
      %41 = arith.subf %40, %35 : vector<2x128xf32>
      %42 = math.exp %41 : vector<2x128xf32>
      %43 = arith.addf %36, %42 : vector<2x128xf32>
      %c0_i32_21 = arith.constant 0 : i32
      %44 = vector.broadcast %c0_i32_21 : i32 to vector<2x128xi32>
      %45 = arith.cmpi eq, %20, %44 : vector<2x128xi32>
      %46 = arith.select %45, %42, %37 : vector<2x128xi1>, vector<2x128xf32>
      %47 = arith.index_cast %arg7 : i32 to index
      %c1_22 = arith.constant 1 : index
      %c0_23 = arith.constant 0 : index
      %c0_24 = arith.constant 0 : index
      %48 = vector.load %arg2[%47, %c1_22, %c0_23, %c0_24] : memref<2x4x2x128xf32, #tpu.memory_space<vmem>>, vector<1x1x2x128xf32>
      %49 = vector.shape_cast %48 : vector<1x1x2x128xf32> to vector<2x128xf32>
      %50 = arith.subf %49, %35 : vector<2x128xf32>
      %51 = math.exp %50 : vector<2x128xf32>
      %52 = arith.addf %43, %51 : vector<2x128xf32>
      %c1_i32_25 = arith.constant 1 : i32
      %53 = vector.broadcast %c1_i32_25 : i32 to vector<2x128xi32>
      %54 = arith.cmpi eq, %20, %53 : vector<2x128xi32>
      %55 = arith.select %54, %51, %46 : vector<2x128xi1>, vector<2x128xf32>
      %56 = arith.index_cast %arg7 : i32 to index
      %c2_26 = arith.constant 2 : index
      %c0_27 = arith.constant 0 : index
      %c0_28 = arith.constant 0 : index
      %57 = vector.load %arg2[%56, %c2_26, %c0_27, %c0_28] : memref<2x4x2x128xf32, #tpu.memory_space<vmem>>, vector<1x1x2x128xf32>
      %58 = vector.shape_cast %57 : vector<1x1x2x128xf32> to vector<2x128xf32>
      %59 = arith.subf %58, %35 : vector<2x128xf32>
      %60 = math.exp %59 : vector<2x128xf32>
      %61 = arith.addf %52, %60 : vector<2x128xf32>
      %c2_i32_29 = arith.constant 2 : i32
      %62 = vector.broadcast %c2_i32_29 : i32 to vector<2x128xi32>
      %63 = arith.cmpi eq, %20, %62 : vector<2x128xi32>
      %64 = arith.select %63, %60, %55 : vector<2x128xi1>, vector<2x128xf32>
      %65 = arith.index_cast %arg7 : i32 to index
      %c3_30 = arith.constant 3 : index
      %c0_31 = arith.constant 0 : index
      %c0_32 = arith.constant 0 : index
      %66 = vector.load %arg2[%65, %c3_30, %c0_31, %c0_32] : memref<2x4x2x128xf32, #tpu.memory_space<vmem>>, vector<1x1x2x128xf32>
      %67 = vector.shape_cast %66 : vector<1x1x2x128xf32> to vector<2x128xf32>
      %68 = arith.subf %67, %35 : vector<2x128xf32>
      %69 = math.exp %68 : vector<2x128xf32>
      %70 = arith.addf %61, %69 : vector<2x128xf32>
      %c3_i32 = arith.constant 3 : i32
      %71 = vector.broadcast %c3_i32 : i32 to vector<2x128xi32>
      %72 = arith.cmpi eq, %20, %71 : vector<2x128xi32>
      %73 = arith.select %72, %69, %64 : vector<2x128xi1>, vector<2x128xf32>
      %74 = tpu.reciprocal %70 : vector<2x128xf32> -> vector<2x128xf32>
      %75 = arith.mulf %73, %74 : vector<2x128xf32>
      %c0_i32_33 = arith.constant 0 : i32
      %76 = vector.broadcast %c0_i32_33 : i32 to vector<2x128xi32>
      %77 = arith.cmpi sge, %20, %76 : vector<2x128xi32>
      %c4_i32 = arith.constant 4 : i32
      %78 = vector.broadcast %c4_i32 : i32 to vector<2x128xi32>
      %79 = arith.cmpi slt, %20, %78 : vector<2x128xi32>
      %80 = arith.andi %77, %79 : vector<2x128xi1>
      %81 = arith.andi %17, %80 : vector<2x128xi1>
      %82 = arith.index_cast %arg7 : i32 to index
      %c0_34 = arith.constant 0 : index
      %c0_35 = arith.constant 0 : index
      %83 = vector.load %arg5[%82, %c0_34, %c0_35] : memref<2x8x128xf32, #tpu.memory_space<vmem>>, vector<1x2x128xf32>
      %84 = vector.shape_cast %83 : vector<1x2x128xf32> to vector<2x128xf32>
      %cst_36 = arith.constant 0.000000e+00 : f32
      %85 = vector.broadcast %cst_36 : f32 to vector<2x128xf32>
      %86 = arith.select %17, %75, %85 : vector<2x128xi1>, vector<2x128xf32>
      %87 = arith.addf %84, %86 : vector<2x128xf32>
      %88 = arith.index_cast %arg7 : i32 to index
      %c0_37 = arith.constant 0 : index
      %c0_38 = arith.constant 0 : index
      %89 = vector.load %arg5[%88, %c0_37, %c0_38] : memref<2x8x128xf32, #tpu.memory_space<vmem>>, vector<1x2x128xf32>
      %90 = vector.shape_cast %89 : vector<1x2x128xf32> to vector<2x128xf32>
      %91 = vector.shape_cast %87 : vector<2x128xf32> to vector<1x2x128xf32>
      tpu.vector_store %arg5[%88, %c0_37, %c0_38], %91 {strides = array<i32>} : memref<2x8x128xf32, #tpu.memory_space<vmem>>, vector<1x2x128xf32>,
      %92 = arith.index_cast %arg7 : i32 to index
      %c0_39 = arith.constant 0 : index
      %c0_40 = arith.constant 0 : index
      %93 = vector.load %arg6[%92, %c0_39, %c0_40] : memref<2x8x128xf32, #tpu.memory_space<vmem>>, vector<1x2x128xf32>
      %94 = vector.shape_cast %93 : vector<1x2x128xf32> to vector<2x128xf32>
      %cst_41 = arith.constant 1.000000e+00 : f32
      %cst_42 = arith.constant 0.000000e+00 : f32
      %95 = vector.broadcast %cst_41 : f32 to vector<2x128xf32>
      %96 = vector.broadcast %cst_42 : f32 to vector<2x128xf32>
      %97 = arith.select %81, %95, %96 : vector<2x128xi1>, vector<2x128xf32>
      %98 = arith.addf %94, %97 : vector<2x128xf32>
      %99 = arith.index_cast %arg7 : i32 to index
      %c0_43 = arith.constant 0 : index
      %c0_44 = arith.constant 0 : index
      %100 = vector.load %arg6[%99, %c0_43, %c0_44] : memref<2x8x128xf32, #tpu.memory_space<vmem>>, vector<1x2x128xf32>
      %101 = vector.shape_cast %100 : vector<1x2x128xf32> to vector<2x128xf32>
      %102 = vector.shape_cast %98 : vector<2x128xf32> to vector<1x2x128xf32>
      tpu.vector_store %arg6[%99, %c0_43, %c0_44], %102 {strides = array<i32>} : memref<2x8x128xf32, #tpu.memory_space<vmem>>, vector<1x2x128xf32>,
    }
    %c2_i32_3 = arith.constant 2 : i32
    %c0_i32_4 = arith.constant 0 : i32
    %5 = arith.cmpi eq, %arg1, %c0_i32_4 : i32
    %6 = arith.extui %5 : i1 to i32
    %c0_i32_5 = arith.constant 0 : i32
    %7 = arith.cmpi ne, %6, %c0_i32_5 : i32
    scf.if %7 {
      %c0 = arith.constant 0 : index
      %c0_6 = arith.constant 0 : index
      %c0_7 = arith.constant 0 : index
      %8 = vector.load %arg5[%c0, %c0_6, %c0_7] : memref<2x8x128xf32, #tpu.memory_space<vmem>>, vector<1x8x128xf32>
      %9 = vector.shape_cast %8 : vector<1x8x128xf32> to vector<8x128xf32>
      %10 = vector.shape_cast %9 : vector<8x128xf32> to vector<1x8x128xf32>
      %cst = arith.constant dense<0.000000e+00> : vector<1xf32>
      %11 = vector.multi_reduction <add>, %10, %cst [1, 2] : vector<1x8x128xf32> to vector<1xf32>
      %12 = vector.shape_cast %11 : vector<1xf32> to vector<1x1x1xf32>
      %13 = vector.extract %12[0, 0, 0] : f32 from vector<1x1x1xf32>
      %c0_8 = arith.constant 0 : index
      %c0_9 = arith.constant 0 : index
      %c0_10 = arith.constant 0 : index
      %14 = vector.load %arg6[%c0_8, %c0_9, %c0_10] : memref<2x8x128xf32, #tpu.memory_space<vmem>>, vector<1x8x128xf32>
      %15 = vector.shape_cast %14 : vector<1x8x128xf32> to vector<8x128xf32>
      %16 = vector.shape_cast %15 : vector<8x128xf32> to vector<1x8x128xf32>
      %cst_11 = arith.constant dense<0.000000e+00> : vector<1xf32>
      %17 = vector.multi_reduction <add>, %16, %cst_11 [1, 2] : vector<1x8x128xf32> to vector<1xf32>
      %18 = vector.shape_cast %17 : vector<1xf32> to vector<1x1x1xf32>
      %19 = vector.extract %18[0, 0, 0] : f32 from vector<1x1x1xf32>
      %cst_12 = arith.constant 2.560000e+02 : f32
      %20 = arith.subf %cst_12, %13 : f32
      %21 = arith.subf %19, %13 : f32
      %cst_13 = arith.constant 5.000000e-01 : f32
      %22 = arith.mulf %cst_13, %20 : f32
      %23 = arith.addf %13, %22 : f32
      %cst_14 = arith.constant 0.699999988 : f32
      %24 = arith.mulf %cst_14, %21 : f32
      %25 = arith.addf %23, %24 : f32
      %cst_15 = arith.constant 9.99999997E-7 : f32
      %26 = arith.addf %25, %cst_15 : f32
      %27 = arith.divf %13, %26 : f32
      %cst_16 = arith.constant 1.000000e+00 : f32
      %28 = arith.subf %cst_16, %27 : f32
      %c0_17 = arith.constant 0 : index
      %c0_18 = arith.constant 0 : index
      %29 = memref.load %arg4[%c0_17, %c0_18] : memref<2x1xf32, #tpu.memory_space<smem>>
      memref.store %28, %arg4[%c0_17, %c0_18] : memref<2x1xf32, #tpu.memory_space<smem>>
      %c1 = arith.constant 1 : index
      %c0_19 = arith.constant 0 : index
      %c0_20 = arith.constant 0 : index
      %30 = vector.load %arg5[%c1, %c0_19, %c0_20] : memref<2x8x128xf32, #tpu.memory_space<vmem>>, vector<1x8x128xf32>
      %31 = vector.shape_cast %30 : vector<1x8x128xf32> to vector<8x128xf32>
      %32 = vector.shape_cast %31 : vector<8x128xf32> to vector<1x8x128xf32>
      %cst_21 = arith.constant dense<0.000000e+00> : vector<1xf32>
      %33 = vector.multi_reduction <add>, %32, %cst_21 [1, 2] : vector<1x8x128xf32> to vector<1xf32>
      %34 = vector.shape_cast %33 : vector<1xf32> to vector<1x1x1xf32>
      %35 = vector.extract %34[0, 0, 0] : f32 from vector<1x1x1xf32>
      %c1_22 = arith.constant 1 : index
      %c0_23 = arith.constant 0 : index
      %c0_24 = arith.constant 0 : index
      %36 = vector.load %arg6[%c1_22, %c0_23, %c0_24] : memref<2x8x128xf32, #tpu.memory_space<vmem>>, vector<1x8x128xf32>
      %37 = vector.shape_cast %36 : vector<1x8x128xf32> to vector<8x128xf32>
      %38 = vector.shape_cast %37 : vector<8x128xf32> to vector<1x8x128xf32>
      %cst_25 = arith.constant dense<0.000000e+00> : vector<1xf32>
      %39 = vector.multi_reduction <add>, %38, %cst_25 [1, 2] : vector<1x8x128xf32> to vector<1xf32>
      %40 = vector.shape_cast %39 : vector<1xf32> to vector<1x1x1xf32>
      %41 = vector.extract %40[0, 0, 0] : f32 from vector<1x1x1xf32>
      %cst_26 = arith.constant 2.560000e+02 : f32
      %42 = arith.subf %cst_26, %35 : f32
      %43 = arith.subf %41, %35 : f32
      %cst_27 = arith.constant 5.000000e-01 : f32
      %44 = arith.mulf %cst_27, %42 : f32
      %45 = arith.addf %35, %44 : f32
      %cst_28 = arith.constant 0.699999988 : f32
      %46 = arith.mulf %cst_28, %43 : f32
      %47 = arith.addf %45, %46 : f32
      %cst_29 = arith.constant 9.99999997E-7 : f32
      %48 = arith.addf %47, %cst_29 : f32
      %49 = arith.divf %35, %48 : f32
      %cst_30 = arith.constant 1.000000e+00 : f32
      %50 = arith.subf %cst_30, %49 : f32
      %c1_31 = arith.constant 1 : index
      %c0_32 = arith.constant 0 : index
      %51 = memref.load %arg4[%c1_31, %c0_32] : memref<2x1xf32, #tpu.memory_space<smem>>
      memref.store %50, %arg4[%c1_31, %c0_32] : memref<2x1xf32, #tpu.memory_space<smem>>
    } else {
    }
    return
  }
  func.func @transform_0(%arg0: i32, %arg1: i32) -> (i32, i32, i32, i32) {
    %c0_i32 = arith.constant 0 : i32
    %c0_i32_0 = arith.constant 0 : i32
    %c0_i32_1 = arith.constant 0 : i32
    return %arg0, %c0_i32, %arg1, %c0_i32_0 : i32, i32, i32, i32
  }
  func.func @transform_1(%arg0: i32, %arg1: i32) -> (i32, i32, i32) {
    %c0_i32 = arith.constant 0 : i32
    %c0_i32_0 = arith.constant 0 : i32
    return %arg0, %arg1, %c0_i32 : i32, i32, i32
  }
  func.func @transform_2(%arg0: i32, %arg1: i32) -> (i32, i32) {
    %c0_i32 = arith.constant 0 : i32
    %c0_i32_0 = arith.constant 0 : i32
    return %arg0, %c0_i32 : i32, i32
  }
}

</mosaic_0001>

<bundles_post_ra>
// kernel: tpu_custom_call.1
= control target key start
LH: loop header
LB: loop body
LE: loop exit
PB: predicated region body
PF: predicated region fallthrough
CT: control target
= control target key end

     0   :  { %7 = vsyncpa [#allocation5], 0  ;;  %s403_s0 = inlined_call_operand.hbm [shape: f32[2,4,2,128], index: 0, kind: input, shape index: {}]   ;;  %s404_s1 = inlined_call_operand.hbm [shape: s32[2,2,128], index: 1, kind: input, shape index: {}]   ;;  %s405_s2 = inlined_call_operand.vmem [shape: f32[2,1], index: 2, kind: output, shape index: {}]  }
   0x1   :  { %8 = vsyncpa [#allocation8], 0 }
   0x2   :  { %9 = vsyncpa [#allocation6], 0  ;;  %s349_s9 = smov [#allocation4]  }
   0x3   :  { %s15_s10 = sshll.u32 %s349_s9, 4  ;;  %s16_s10 = int_to_ptr.vmem [resolvable:$true] %s15_s10 }
   0x4   :  { %s291_s11 = scalar_lea.vmem %s16_s10, 256  ;;  %p296_p1 = scmp.lt.s32.totalorder %s16_s10, %s16_s10 }
   0x5   :  { %p292_p0 = scmp.ne.s32.totalorder %s16_s10, %s291_s11  ;;  %p297_p2 = scmp.lt.s32.totalorder %s291_s11, %s291_s11 }
   0x7   :  { %p298_p3 = por %p297_p2, %p296_p1 }
   0x9   :  { %p299_p4 = pnand %p298_p3, %p292_p0 }
   0xb   :  { %302 = shalt.err (!%p299_p4)
}
   0xc   :  { %s350_s12 = smov 32   ;;  %s351_s13 = smov 2  }
   0xd   :  { %21 = dma.hbm_to_vmem [thread:$0]  %s403_s0, 256, %s16_s10, [#allocation5], %s350_s12, %s350_s12, %s351_s13  }
   0xe   :  { %s352_s16 = smov [#allocation7]  }
   0xf   :  { %s27_s17 = sshll.u32 %s352_s16, 4  ;;  %s28_s17 = int_to_ptr.vmem [resolvable:$true] %s27_s17 }
  0x10   :  { %s311_s18 = scalar_lea.vmem %s28_s17, 64  ;;  %p316_p6 = scmp.lt.s32.totalorder %s28_s17, %s28_s17 }
  0x11   :  { %p312_p5 = scmp.ne.s32.totalorder %s28_s17, %s311_s18  ;;  %p317_p7 = scmp.lt.s32.totalorder %s311_s18, %s311_s18 }
  0x13   :  { %p318_p8 = por %p317_p7, %p316_p6 }
  0x15   :  { %p319_p9 = pnand %p318_p8, %p312_p5 }
  0x17   :  { %322 = shalt.err (!%p319_p9)
}
  0x18   :  { %33 = dma.hbm_to_vmem [thread:$0]  %s404_s1, 64, %s28_s17, [#allocation8], %s350_s12, %s350_s12, %s351_s13  }
  0x19   :  { %339 = dma.done.wait [#allocation5], 256  }
  0x1a   :  { %340 = vsyncadd [#allocation5], 4294967040 }
  0x1b   :  { %341 = dma.done.wait [#allocation8], 64  }
  0x1c   :  { %342 = vsyncadd [#allocation8], 4294967232  ;;  %v353_v0 = vmov 0.0   ;;  %s377_s0 = smov 0  }
  0x1d   :  { %44 = vst [vmem:[#allocation2] sm:$0xff] %v353_v0  ;;  %45 = vst [vmem:[#allocation2 + $0x8] sm:$0xff] %v353_v0 }
  0x1e   :  { %46 = vst [vmem:[#allocation3] sm:$0xff] %v353_v0  ;;  %47 = vst [vmem:[#allocation3 + $0x8] sm:$0xff] %v353_v0 }
  0x1f LB: > { %v55_v1 = vlaneseq  ;;  %s234_s1 = sshll.u32 %s347_s0, 1  ;;  %s384_s21 = sshll.u32 %s347_s0, 3  ;;  %v354_v15 = vmov 0.0   ;;  %s347_s0 = sphi %s377_s0, %s54_s0  }
  0x20   : > { %s68_s22 = scalar_lea.vmem [#allocation4], %s384_s21  ;;  %s65_s23 = scalar_lea.vmem [#allocation7], %s234_s1 }
  0x21   : > { %v56_v2 = vshrl.u32 %v55_v1, 7  ;;  %v61_v3 = vand.u32 127, %v55_v1  ;;  %v69_v5 = vld [vmem:[%s68_s22] sm:$0x3]  ;;  %v237_v6 = vld [vmem:[%s68_s22 + $0x2] sm:$0x3] }
  0x22   : > { %v239_v7 = vld [vmem:[%s68_s22 + $0x4] sm:$0x3]  ;;  %v66_v9 = vld [vmem:[%s65_s23] sm:$0x3]  ;;  %v73_v10 = vmax.f32 %v69_v5, %v237_v6  ;;  %v241_v11 = vld [vmem:[%s68_s22 + $0x6] sm:$0x3] }
  0x23   : > { %v59_v4 = vmul.u32 128, %v56_v2  ;;  %vm108_vm0 = vcmp.ge.s32.totalorder %v66_v9, 0  ;;  %vm109_vm1 = vcmp.lt.s32.totalorder %v66_v9, 4  ;;  %s117_s24 = scalar_lea.vmem [#allocation3], %s384_s21  ;;  %vm86_vm5 = vcmp.eq.s32.totalorder %v66_v9, 0  ;;  %s112_s25 = scalar_lea.vmem [#allocation2], %s384_s21 }
  0x24   : > { %v77_v12 = vmax.f32 %v73_v10, %v239_v7  ;;  %vm110_vm3 = vmand %vm108_vm0, %vm109_vm1  ;;  %vm92_vm6 = vcmp.eq.s32.totalorder %v66_v9, 1  ;;  %vm98_vm7 = vcmp.eq.s32.totalorder %v66_v9, 2  ;;  %vm104_vm8 = vcmp.eq.s32.totalorder %v66_v9, 3  ;;  %v113_v39 = vld [vmem:[%s112_s25] sm:$0x3]  ;;  %s54_s0 = sadd.s32 1, %s347_s0  }
  0x25   : > { %v62_v8 = vadd.s32 %v61_v3, %v59_v4  ;;  %v118_v13 = vld [vmem:[%s117_s24] sm:$0x3]  ;;  %p51_p10 = scmp.ge.s32.totalorder %s54_s0, 2  }
  0x26   : > { %v81_v14 = vmax.f32 %v77_v12, %v241_v11  ;;  %s201_s1 = sshll.u32 (%p51_p10), %s405_s2, 4  ;;  %s202_s1 = int_to_ptr.vmem [resolvable:$true] %s201_s1 }
  0x27   : > { %vm63_vm2 = vcmp.lt.s32.totalorder %v62_v8, 256  ;;  %s323_s23 = scalar_lea.vmem (%p51_p10), %s202_s1, 32  ;;  %p328_p12 = scmp.lt.s32.totalorder (%p51_p10), %s202_s1, %s202_s1 }
  0x28   : > { %vm111_vm4 = vmand %vm63_vm2, %vm110_vm3  ;;  %v82_v18 = vsub.f32 %v69_v5, %v81_v14  ;;  %v88_v19 = vsub.f32 %v237_v6, %v81_v14  ;;  %v94_v20 = vsub.f32 %v239_v7, %v81_v14  ;;  %v100_v21 = vsub.f32 %v241_v11, %v81_v14  ;;  %p324_p11 = scmp.ne.s32.totalorder (%p51_p10), %s202_s1, %s323_s23  ;;  %p329_p13 = scmp.lt.s32.totalorder (%p51_p10), %s323_s23, %s323_s23 }
  0x29   : > { %v119_v16 = vsel %vm111_vm4, 1.0, %v354_v15 }
  0x2a   : > { %v120_v17 = vadd.f32 %v119_v16, %v118_v13  ;;  %v83_v22 = vmul.f32 1.442695, %v82_v18  ;;  %v89_v23 = vmul.f32 1.442695, %v88_v19  ;;  %v95_v24 = vmul.f32 1.442695, %v94_v20  ;;  %p330_p0 = por (%p51_p10), %p329_p13, %p328_p12 }
  0x2b   : > { %v101_v25 = vmul.f32 1.442695, %v100_v21 }
  0x2c   : > { %121 = vst [vmem:[%s117_s24] sm:$0x3] %v120_v17  ;;  %269 = vpow2.f32 %v83_v22  ;;  %p331_p1 = pnand (%p51_p10), %p330_p0, %p324_p11 }
  0x2d   : > { %271 = vpow2.f32 %v89_v23 }
  0x2e   : > { %273 = vpow2.f32 %v95_v24 }
  0x2f   : > { %275 = vpow2.f32 %v101_v25 }
  0x33   :  { %v135_v44 = vld [vmem:[#allocation3] sm:$0xff] (%p51_p10)  ;;  %v171_v45 = vld [vmem:[#allocation3 + $0x8] sm:$0xff] (%p51_p10) }
  0x39   : > { %v270_v26 = vpop.eup %269 }
  0x3a   : > { %v272_v27 = vpop.eup %271  ;;  %v87_v33 = vsel %vm86_vm5, %v270_v26, 0.0 }
  0x3b   : > { %v274_v28 = vpop.eup %273  ;;  %v91_v29 = vadd.f32 %v272_v27, %v270_v26  ;;  %v93_v34 = vsel %vm92_vm6, %v272_v27, %v87_v33 }
  0x3c   : > { %v276_v30 = vpop.eup %275  ;;  %v99_v35 = vsel %vm98_vm7, %v274_v28, %v93_v34 }
  0x3d   : > { %v97_v31 = vadd.f32 %v274_v28, %v91_v29  ;;  %v105_v36 = vsel %vm104_vm8, %v276_v30, %v99_v35 }
  0x3f   : > { %v103_v32 = vadd.f32 %v276_v30, %v97_v31 }
  0x41   : > { %277 = vrcp.f32 %v103_v32 }
  0x4e   : > { %v278_v37 = vpop.eup %277 }
  0x4f   : > { %v107_v38 = vmul.f32 %v278_v37, %v105_v36 }
  0x50   :  { %53 = sbr.rel (!%p51_p10) target bundleno = 31 (0x1f), region = 62 }
  0x51   : > { %v114_v40 = vsel %vm63_vm2, %v107_v38, 0.0 }
  0x52   : > { %v115_v41 = vadd.f32 %v114_v40, %v113_v39 }
  0x54   : > { %116 = vst [vmem:[%s112_s25] sm:$0x3] %v115_v41 }
  0x5b   :  { %v125_v42 = vld [vmem:[#allocation2] sm:$0xff]  ;;  %v160_v43 = vld [vmem:[#allocation2 + $0x8] sm:$0xff] }
  0x5c   :  { %126 = vadd.xlane.f32.xlu0 %v125_v42  ;;  %161 = vadd.xlane.f32.xlu1 %v160_v43 }
  0x60   :  { %136 = vadd.xlane.f32.xlu0 %v135_v44  ;;  %172 = vadd.xlane.f32.xlu1 %v171_v45 }
  0xe5   :  { %v127_v46 = vpop.xlane.xlu0 %126  ;;  %v162_v60 = vpop.xlane.xlu1 %161 }
  0xe6   :  { %v128_v47 = vrot.slane %v127_v46, 4  ;;  %v163_v62 = vrot.slane %v162_v60, 4 }
  0xe8   :  { %v129_v48 = vadd.f32 %v128_v47, %v127_v46  ;;  %v164_v0 = vadd.f32 %v163_v62, %v162_v60 }
  0xe9   :  { %v137_v49 = vpop.xlane.xlu0 %136  ;;  %v173_v61 = vpop.xlane.xlu1 %172 }
  0xea   :  { %v130_v50 = vrot.slane %v129_v48, 2  ;;  %v138_v51 = vrot.slane %v137_v49, 4  ;;  %v174_v63 = vrot.slane %v173_v61, 4  ;;  %v165_v3 = vrot.slane %v164_v0, 2 }
  0xec   :  { %v139_v52 = vadd.f32 %v138_v51, %v137_v49  ;;  %v131_v53 = vadd.f32 %v130_v50, %v129_v48  ;;  %v175_v1 = vadd.f32 %v174_v63, %v173_v61  ;;  %v166_v5 = vadd.f32 %v165_v3, %v164_v0 }
  0xee   :  { %v140_v54 = vrot.slane %v139_v52, 2  ;;  %v132_v55 = vrot.slane %v131_v53, 1  ;;  %v176_v4 = vrot.slane %v175_v1, 2  ;;  %v167_v7 = vrot.slane %v166_v5, 1 }
  0xf0   :  { %v141_v56 = vadd.f32 %v140_v54, %v139_v52  ;;  %v133_v57 = vadd.f32 %v132_v55, %v131_v53  ;;  %v177_v6 = vadd.f32 %v176_v4, %v175_v1  ;;  %v168_v10 = vadd.f32 %v167_v7, %v166_v5 }
  0xf2   :  { %242 = vpush %v133_v57  ;;  %v142_v58 = vrot.slane %v141_v56, 1  ;;  %v178_v8 = vrot.slane %v177_v6, 1 }
  0xf4   :  { %v143_v59 = vadd.f32 %v142_v58, %v141_v56  ;;  %v179_v11 = vadd.f32 %v178_v8, %v177_v6 }
  0xf6   :  { %244 = vpush %v143_v59 }
 0x123   :  { %s394_s26 = spop %242 }
 0x124   :  { %s145_s27 = ssub.f32 256.0, %s394_s26 }
 0x126   :  { %s147_s28 = smul.f32 0.5, %s145_s27 }
 0x127   :  { %s245_s29 = spop %244 }
 0x128   :  { %s146_s30 = ssub.f32 %s245_s29, %s394_s26 }
 0x129   :  { %s148_s3 = sadd.f32 %s394_s26, %s147_s28 }
 0x12a   :  { %s149_s4 = smul.f32 0.7, %s146_s30 }
 0x12c   :  { %s150_s5 = sadd.f32 %s149_s4, %s148_s3 }
 0x12e   :  { %s151_s6 = sadd.f32 1e-06, %s150_s5 }
 0x130   :  { %v152_v2 = vstv %s151_s6 }
 0x131   :  { %279 = vrcp.f32 %v152_v2 }
 0x13e   :  { %v280_v9 = vpop.eup %279 }
 0x13f   :  { %246 = vpush %v280_v9 }
 0x140   :  { %248 = vpush %v168_v10 }
 0x141   :  { %250 = vpush %v179_v11 }
 0x170   :  { %s247_s7 = spop %246 }
 0x171   :  { %s155_s8 = smul.f32 %s247_s7, %s394_s26  ;;  %s249_s9 = spop %248 }
 0x172   :  { %s181_s10 = ssub.f32 256.0, %s249_s9  ;;  %s251_s11 = spop %250 }
 0x173   :  { %s156_s12 = ssub.f32 1.0, %s155_s8 }
 0x174   :  { %s183_s13 = smul.f32 0.5, %s181_s10  ;;  %s182_s14 = ssub.f32 %s251_s11, %s249_s9 }
 0x175   :  { %158 = sst [smem:[#allocation9]] %s156_s12 }
 0x176   :  { %s184_s15 = sadd.f32 %s249_s9, %s183_s13  ;;  %s185_s16 = smul.f32 0.7, %s182_s14 }
 0x178   :  { %s186_s17 = sadd.f32 %s185_s16, %s184_s15 }
 0x17a   :  { %s187_s18 = sadd.f32 1e-06, %s186_s17 }
 0x17c   :  { %v188_v12 = vstv %s187_s18 }
 0x17d   :  { %281 = vrcp.f32 %v188_v12 }
 0x18a   :  { %v282_v13 = vpop.eup %281 }
 0x18b   :  { %252 = vpush %v282_v13 }
 0x1bc   :  { %s253_s19 = spop %252 }
 0x1bd   :  { %s191_s21 = smul.f32 %s253_s19, %s249_s9 }
 0x1bf   :  { %s192_s22 = ssub.f32 1.0, %s191_s21 }
 0x1c1   :  { %194 = sst [smem:[#allocation9 + $0x80]] %s192_s22 }
 0x1c2   :  { %334 = shalt.err (!%p331_p1)
}
 0x1c3   :  { %s355_s24 = smov [#allocation9]  }
 0x1c4   :  { %204 = dma.smem_to_vmem %s355_s24, 32, %s202_s1, [#allocation6]  }
 0x1c5   :  { %343 = dma.done.wait [#allocation6], 32  }
 0x1c6   :  { %344 = vsyncadd [#allocation6], 4294967264 }
 0x1c7   :  { %208 = sfence }
 0x1c8   :  { %209 = vsyncpa [#allocation5], 1 }
 0x1c9   :  { %210 = vsyncpa [#allocation8], 1 }
 0x1ca   :  { %211 = vsyncpa [#allocation6], 1 }

</bundles_post_ra>
